<compile_context>
chip_gen: v6e
topology: v6e:2x2x1
jax: 0.10.0
libtpu: 0.0.40
codegen_flags: <defaults>
</compile_context>

<pallas_src>
import jax
import jax.numpy as jnp
from jax.experimental import pallas as pl
from jax.experimental.pallas import tpu as pltpu

LANE = 128


def _leaky_relu(z, slope=0.01):
    # nn.LeakyReLU() default negative_slope = 0.01 (f32 epilogue).
    return jnp.where(z >= 0, z, slope * z)


def _round_up(n, m):
    return ((n + m - 1) // m) * m


def _pad_to(a, shape):
    pads = [(0, s - d) for d, s in zip(a.shape, shape)]
    return jnp.pad(a, pads)


# --------------------------------------------------------------------------
# Kernel: 4 fused (matmul + bias + LeakyReLU) stages.
#   x_ref : (bt, input_dim)  bf16   (narrow K is fine — single MXU pass)
#   w1    : (input_dim, 128) bf16   w2, w3 : (128, 128) bf16
#   w4    : (128, output_dim) bf16  biases : f32, padded to match N
#   o_ref : (bt, output_dim) f32
# --------------------------------------------------------------------------
def expnet_kernel(x_ref,
                  w1_ref, b1_ref,
                  w2_ref, b2_ref,
                  w3_ref, b3_ref,
                  w4_ref, b4_ref,
                  o_ref):
    h = jnp.dot(x_ref[...], w1_ref[...],
                preferred_element_type=jnp.float32) + b1_ref[...]
    h = _leaky_relu(h)                        # dropout1 -> identity (eval)

    h = jnp.dot(h.astype(jnp.bfloat16), w2_ref[...],
                preferred_element_type=jnp.float32) + b2_ref[...]
    h = _leaky_relu(h)                        # dropout2 -> identity (eval)

    h = jnp.dot(h.astype(jnp.bfloat16), w3_ref[...],
                preferred_element_type=jnp.float32) + b3_ref[...]
    h = _leaky_relu(h)

    o_ref[...] = jnp.dot(h.astype(jnp.bfloat16), w4_ref[...],
                         preferred_element_type=jnp.float32) + b4_ref[...]


# --------------------------------------------------------------------------
# Parameter preparation:
#   * hidden feature dims (h1, pathway, h2) zero-padded to multiples of 128
#   * w1 keeps K = input_dim (input is streamed unpadded)
#   * w4 keeps N = output_dim (output is written unpadded)
#   * weights -> bf16 (MXU inputs), biases -> f32 (VPU epilogue)
# Do this once; reuse across forward calls.
# --------------------------------------------------------------------------
def prepare_params(params):
    w1, b1 = params["w1"], params["b1"]
    w2, b2 = params["w2"], params["b2"]
    w3, b3 = params["w3"], params["b3"]
    w4, b4 = params["w4"], params["b4"]

    h1p = _round_up(w1.shape[1], LANE)   # hidden_one_dim -> 128
    pwp = _round_up(w2.shape[1], LANE)   # pathway_dim    -> 128
    h2p = _round_up(w3.shape[1], LANE)   # hidden_two_dim -> 128

    return {
        "w1": _pad_to(w1, (w1.shape[0], h1p)).astype(jnp.bfloat16),
        "b1": _pad_to(b1, (1, h1p)).astype(jnp.float32),
        "w2": _pad_to(w2, (h1p, pwp)).astype(jnp.bfloat16),
        "b2": _pad_to(b2, (1, pwp)).astype(jnp.float32),
        "w3": _pad_to(w3, (pwp, h2p)).astype(jnp.bfloat16),
        "b3": _pad_to(b3, (1, h2p)).astype(jnp.float32),
        "w4": _pad_to(w4, (h2p, w4.shape[1])).astype(jnp.bfloat16),
        "b4": b4.astype(jnp.float32),
    }


def _default_batch_tile(B):
    """Largest tile with a small (ideally even) grid.

    * exactly 2 steps when B splits cleanly (megacore on v7x gets both TCs),
    * otherwise one step (batch_tile == B) for small/medium B,
    * for very large B, tiles that are multiples of 256 (v6e MXU rows).
    """
    if B >= 32 and B % 2 == 0 and (B // 2) % 16 == 0 and B // 2 <= 2048:
        return B // 2
    if B <= 4096:
        return B
    for t in (2048, 1024, 512, 256, 128, 64, 32, 16, 8):
        if B % t == 0:
            return t
    return B


def expnet_forward(x, padded_params, *, batch_tile=None):
    """x: (B, input_dim) float.  padded_params: output of prepare_params."""
    B, in_dim = x.shape
    pp = padded_params
    out_dim = pp["w4"].shape[1]

    if batch_tile is None:
        batch_tile = _default_batch_tile(B)
    assert B % batch_tile == 0, "B must be divisible by batch_tile"
    assert batch_tile == B or batch_tile % 16 == 0, \
        "batch_tile must be a multiple of 16 (bf16 sublane rule) or equal B"

    # Stream the input in bf16 (it is a matmul input anyway): halves DMA bytes.
    x_bf16 = x.astype(jnp.bfloat16)

    def full(arr):
        # Whole-array block, constant index map: fetched once, resident in
        # VMEM across all grid steps (never re-DMA'd).
        return pl.BlockSpec(arr.shape, lambda i: (0,) * arr.ndim)

    grid = (B // batch_tile,)

    param_bytes = sum(int(v.size) * v.dtype.itemsize for v in pp.values())
    cost = pl.CostEstimate(
        flops=2 * B * (in_dim * pp["w1"].shape[1]
                       + pp["w2"].shape[0] * pp["w2"].shape[1]
                       + pp["w3"].shape[0] * pp["w3"].shape[1]
                       + pp["w4"].shape[0] * out_dim),
        transcendentals=0,
        bytes_accessed=int(B * in_dim * 2 + B * out_dim * 4 + param_bytes),
    )

    return pl.pallas_call(
        expnet_kernel,
        out_shape=jax.ShapeDtypeStruct((B, out_dim), jnp.float32),
        grid_spec=pltpu.PrefetchScalarGridSpec(
            num_scalar_prefetch=0,
            grid=grid,
            in_specs=[
                pl.BlockSpec((batch_tile, in_dim), lambda i: (i, 0)),
                full(pp["w1"]), full(pp["b1"]),
                full(pp["w2"]), full(pp["b2"]),
                full(pp["w3"]), full(pp["b3"]),
                full(pp["w4"]), full(pp["b4"]),
            ],
            out_specs=pl.BlockSpec((batch_tile, out_dim), lambda i: (i, 0)),
        ),
        compiler_params=pltpu.CompilerParams(
            dimension_semantics=("parallel",),   # batch steps -> megacore on v7x
            vmem_limit_bytes=32 * 1024 * 1024,   # plenty on v5e/v6e/v7x at these sizes
        ),
        cost_estimate=cost,
    )(x_bf16, pp["w1"], pp["b1"], pp["w2"], pp["b2"],
      pp["w3"], pp["b3"], pp["w4"], pp["b4"])


# --------------------------------------------------------------------------
# Synthetic parameters + sparsity masks (mirrors the PyTorch __init__).
# --------------------------------------------------------------------------
def make_params(key, input_dim, hidden_one_dim, pathway_dim, hidden_two_dim,
                output_dim):
    ks = jax.random.split(key, 10)

    def linear(kw, kb, fan_in, fan_out):
        bound = 1.0 / jnp.sqrt(fan_in)
        w = jax.random.uniform(kw, (fan_in, fan_out), jnp.float32, -bound, bound)
        b = jax.random.uniform(kb, (1, fan_out), jnp.float32, -bound, bound)
        return w, b

    w1, b1 = linear(ks[0], ks[1], input_dim, hidden_one_dim)
    w2, b2 = linear(ks[2], ks[3], hidden_one_dim, pathway_dim)
    w3, b3 = linear(ks[4], ks[5], pathway_dim, hidden_two_dim)
    w4, b4 = linear(ks[6], ks[7], hidden_two_dim, output_dim)

    # Sparsity masks: PyTorch multiplies weight (out,in) by mask.T; with our
    # (in,out) weights we multiply by the mask directly -- same semantics.
    m1 = (jax.random.uniform(ks[8], (input_dim, hidden_one_dim)) > 0.5).astype(jnp.float32)
    m2 = (jax.random.uniform(ks[9], (hidden_one_dim, pathway_dim)) > 0.5).astype(jnp.float32)
    w1 = w1 * m1
    w2 = w2 * m2

    return {"w1": w1, "b1": b1, "w2": w2, "b2": b2,
            "w3": w3, "b3": b3, "w4": w4, "b4": b4}


# Pure-JAX references.
def expnet_reference_bf16(x, pp):
    """Same math as the kernel (bf16 matmul inputs, f32 accumulation)."""
    def lin(h, w, b):
        return jnp.dot(h.astype(jnp.bfloat16), w,
                       preferred_element_type=jnp.float32) + b
    h = _leaky_relu(lin(x, pp["w1"], pp["b1"]))
    h = _leaky_relu(lin(h, pp["w2"], pp["b2"]))
    h = _leaky_relu(lin(h, pp["w3"], pp["b3"]))
    return lin(h, pp["w4"], pp["b4"])


def expnet_reference_f32(x, p):
    """Full-precision, unpadded reference (module semantics)."""
    h = _leaky_relu(x @ p["w1"] + p["b1"])
    h = _leaky_relu(h @ p["w2"] + p["b2"])
    h = _leaky_relu(h @ p["w3"] + p["b3"])
    return h @ p["w4"] + p["b4"]


if __name__ == "__main__":
    # Small shapes consistent with the module's forward.
    B = 64
    input_dim, hidden_one_dim, pathway_dim, hidden_two_dim, output_dim = 32, 32, 16, 32, 2

    key = jax.random.PRNGKey(0)
    kx, kp = jax.random.split(key)
    x = jax.random.normal(kx, (B, input_dim), jnp.float32)
    params = make_params(kp, input_dim, hidden_one_dim, pathway_dim,
                         hidden_two_dim, output_dim)
    pparams = prepare_params(params)

    # Default tile: B//2 = 32 -> grid of 2 steps (megacore-friendly on v7x).
    out = expnet_forward(x, pparams)
    out = jax.block_until_ready(out)
    assert out.shape == (B, output_dim)

    # Exact-math check vs a JAX reference using the same padded bf16 weights.
    ref_bf16 = expnet_reference_bf16(x, pparams)
    assert jnp.allclose(out, ref_bf16, atol=2e-3, rtol=2e-3), \
        "mismatch vs bf16-consistent reference"

    # Sanity check vs the full-f32 unpadded module semantics (bf16 rounding only).
    ref_f32 = expnet_reference_f32(x, params)
    assert jnp.allclose(out, ref_f32, atol=1e-1, rtol=1e-1), \
        "padding/masking semantics broken vs f32 reference"

    print("KERNEL_OK")
</pallas_src>

<mosaic_0001>
module attributes {stable_mosaic.version = 11 : i64} {
  func.func @expnet_kernel(%arg0: i32, %arg1: memref<32x32xbf16, #tpu.memory_space<vmem>>, %arg2: memref<32x128xbf16, #tpu.memory_space<vmem>>, %arg3: memref<1x128xf32, #tpu.memory_space<vmem>>, %arg4: memref<128x128xbf16, #tpu.memory_space<vmem>>, %arg5: memref<1x128xf32, #tpu.memory_space<vmem>>, %arg6: memref<128x128xbf16, #tpu.memory_space<vmem>>, %arg7: memref<1x128xf32, #tpu.memory_space<vmem>>, %arg8: memref<128x2xbf16, #tpu.memory_space<vmem>>, %arg9: memref<1x2xf32, #tpu.memory_space<vmem>>, %arg10: memref<32x2xf32, #tpu.memory_space<vmem>>) attributes {dimension_semantics = [#tpu.dimension_semantics<parallel>], iteration_bounds = array<i64: 2>, scalar_prefetch = 0 : i64, scratch_operands = 0 : i64, tpu.core_type = #tpu.core_type<tc>, window_params = [{transform_indices = @transform_0, window_bounds = array<i64: 32, 32>}, {pipeline_mode = #tpu.pipeline_mode<synchronous>, transform_indices = @transform_1, window_bounds = array<i64: 32, 128>}, {pipeline_mode = #tpu.pipeline_mode<synchronous>, transform_indices = @transform_2, window_bounds = array<i64: 1, 128>}, {pipeline_mode = #tpu.pipeline_mode<synchronous>, transform_indices = @transform_3, window_bounds = array<i64: 128, 128>}, {pipeline_mode = #tpu.pipeline_mode<synchronous>, transform_indices = @transform_4, window_bounds = array<i64: 1, 128>}, {pipeline_mode = #tpu.pipeline_mode<synchronous>, transform_indices = @transform_5, window_bounds = array<i64: 128, 128>}, {pipeline_mode = #tpu.pipeline_mode<synchronous>, transform_indices = @transform_6, window_bounds = array<i64: 1, 128>}, {pipeline_mode = #tpu.pipeline_mode<synchronous>, transform_indices = @transform_7, window_bounds = array<i64: 128, 2>}, {pipeline_mode = #tpu.pipeline_mode<synchronous>, transform_indices = @transform_8, window_bounds = array<i64: 1, 2>}, {transform_indices = @transform_9, window_bounds = array<i64: 32, 2>}]} {
    %c0 = arith.constant 0 : index
    %c0_0 = arith.constant 0 : index
    %0 = vector.load %arg1[%c0, %c0_0] : memref<32x32xbf16, #tpu.memory_space<vmem>>, vector<32x32xbf16>
    %c0_1 = arith.constant 0 : index
    %c0_2 = arith.constant 0 : index
    %1 = vector.load %arg2[%c0_1, %c0_2] : memref<32x128xbf16, #tpu.memory_space<vmem>>, vector<32x128xbf16>
    %cst = arith.constant dense<0.000000e+00> : vector<32x128xf32>
    %2 = tpu.matmul %0, %1, %cst {dimension_numbers = #tpu.dot_dimension_numbers<[1], [0], [0], [1], [0, 0, 1, 1], [], []>} : vector<32x32xbf16>, vector<32x128xbf16>, vector<32x128xf32> -> vector<32x128xf32>
    %c0_3 = arith.constant 0 : index
    %c0_4 = arith.constant 0 : index
    %3 = vector.load %arg3[%c0_3, %c0_4] : memref<1x128xf32, #tpu.memory_space<vmem>>, vector<1x128xf32>
    %4 = vector.broadcast %3 : vector<1x128xf32> to vector<32x128xf32>
    %5 = arith.addf %2, %4 : vector<32x128xf32>
    %cst_5 = arith.constant 0.000000e+00 : f32
    %6 = vector.broadcast %cst_5 : f32 to vector<32x128xf32>
    %7 = arith.cmpf oge, %5, %6 : vector<32x128xf32>
    %cst_6 = arith.constant 0.00999999977 : f32
    %8 = vector.broadcast %cst_6 : f32 to vector<32x128xf32>
    %9 = arith.mulf %8, %5 : vector<32x128xf32>
    %10 = arith.select %7, %5, %9 : vector<32x128xi1>, vector<32x128xf32>
    %11 = arith.truncf %10 : vector<32x128xf32> to vector<32x128xbf16>
    %c0_7 = arith.constant 0 : index
    %c0_8 = arith.constant 0 : index
    %12 = vector.load %arg4[%c0_7, %c0_8] : memref<128x128xbf16, #tpu.memory_space<vmem>>, vector<128x128xbf16>
    %cst_9 = arith.constant dense<0.000000e+00> : vector<32x128xf32>
    %13 = tpu.matmul %11, %12, %cst_9 {dimension_numbers = #tpu.dot_dimension_numbers<[1], [0], [0], [1], [0, 0, 1, 1], [], []>} : vector<32x128xbf16>, vector<128x128xbf16>, vector<32x128xf32> -> vector<32x128xf32>
    %c0_10 = arith.constant 0 : index
    %c0_11 = arith.constant 0 : index
    %14 = vector.load %arg5[%c0_10, %c0_11] : memref<1x128xf32, #tpu.memory_space<vmem>>, vector<1x128xf32>
    %15 = vector.broadcast %14 : vector<1x128xf32> to vector<32x128xf32>
    %16 = arith.addf %13, %15 : vector<32x128xf32>
    %cst_12 = arith.constant 0.000000e+00 : f32
    %17 = vector.broadcast %cst_12 : f32 to vector<32x128xf32>
    %18 = arith.cmpf oge, %16, %17 : vector<32x128xf32>
    %cst_13 = arith.constant 0.00999999977 : f32
    %19 = vector.broadcast %cst_13 : f32 to vector<32x128xf32>
    %20 = arith.mulf %19, %16 : vector<32x128xf32>
    %21 = arith.select %18, %16, %20 : vector<32x128xi1>, vector<32x128xf32>
    %22 = arith.truncf %21 : vector<32x128xf32> to vector<32x128xbf16>
    %c0_14 = arith.constant 0 : index
    %c0_15 = arith.constant 0 : index
    %23 = vector.load %arg6[%c0_14, %c0_15] : memref<128x128xbf16, #tpu.memory_space<vmem>>, vector<128x128xbf16>
    %cst_16 = arith.constant dense<0.000000e+00> : vector<32x128xf32>
    %24 = tpu.matmul %22, %23, %cst_16 {dimension_numbers = #tpu.dot_dimension_numbers<[1], [0], [0], [1], [0, 0, 1, 1], [], []>} : vector<32x128xbf16>, vector<128x128xbf16>, vector<32x128xf32> -> vector<32x128xf32>
    %c0_17 = arith.constant 0 : index
    %c0_18 = arith.constant 0 : index
    %25 = vector.load %arg7[%c0_17, %c0_18] : memref<1x128xf32, #tpu.memory_space<vmem>>, vector<1x128xf32>
    %26 = vector.broadcast %25 : vector<1x128xf32> to vector<32x128xf32>
    %27 = arith.addf %24, %26 : vector<32x128xf32>
    %cst_19 = arith.constant 0.000000e+00 : f32
    %28 = vector.broadcast %cst_19 : f32 to vector<32x128xf32>
    %29 = arith.cmpf oge, %27, %28 : vector<32x128xf32>
    %cst_20 = arith.constant 0.00999999977 : f32
    %30 = vector.broadcast %cst_20 : f32 to vector<32x128xf32>
    %31 = arith.mulf %30, %27 : vector<32x128xf32>
    %32 = arith.select %29, %27, %31 : vector<32x128xi1>, vector<32x128xf32>
    %33 = arith.truncf %32 : vector<32x128xf32> to vector<32x128xbf16>
    %c0_21 = arith.constant 0 : index
    %c0_22 = arith.constant 0 : index
    %34 = vector.load %arg8[%c0_21, %c0_22] : memref<128x2xbf16, #tpu.memory_space<vmem>>, vector<128x2xbf16>
    %cst_23 = arith.constant dense<0.000000e+00> : vector<32x2xf32>
    %35 = tpu.matmul %33, %34, %cst_23 {dimension_numbers = #tpu.dot_dimension_numbers<[1], [0], [0], [1], [0, 0, 1, 1], [], []>} : vector<32x128xbf16>, vector<128x2xbf16>, vector<32x2xf32> -> vector<32x2xf32>
    %c0_24 = arith.constant 0 : index
    %c0_25 = arith.constant 0 : index
    %36 = vector.load %arg9[%c0_24, %c0_25] : memref<1x2xf32, #tpu.memory_space<vmem>>, vector<1x2xf32>
    %37 = vector.broadcast %36 : vector<1x2xf32> to vector<32x2xf32>
    %38 = arith.addf %35, %37 : vector<32x2xf32>
    %c0_26 = arith.constant 0 : index
    %c0_27 = arith.constant 0 : index
    %39 = vector.load %arg10[%c0_26, %c0_27] : memref<32x2xf32, #tpu.memory_space<vmem>>, vector<32x2xf32>
    tpu.vector_store %arg10[%c0_26, %c0_27], %38 {strides = array<i32>} : memref<32x2xf32, #tpu.memory_space<vmem>>, vector<32x2xf32>,
    return
  }
  func.func @transform_0(%arg0: i32) -> (i32, i32) {
    %c0_i32 = arith.constant 0 : i32
    %c0_i32_0 = arith.constant 0 : i32
    return %arg0, %c0_i32 : i32, i32
  }
  func.func @transform_1(%arg0: i32) -> (i32, i32) {
    %c0_i32 = arith.constant 0 : i32
    %c0_i32_0 = arith.constant 0 : i32
    %c0_i32_1 = arith.constant 0 : i32
    return %c0_i32, %c0_i32_0 : i32, i32
  }
  func.func @transform_2(%arg0: i32) -> (i32, i32) {
    %c0_i32 = arith.constant 0 : i32
    %c0_i32_0 = arith.constant 0 : i32
    %c0_i32_1 = arith.constant 0 : i32
    return %c0_i32, %c0_i32_0 : i32, i32
  }
  func.func @transform_3(%arg0: i32) -> (i32, i32) {
    %c0_i32 = arith.constant 0 : i32
    %c0_i32_0 = arith.constant 0 : i32
    %c0_i32_1 = arith.constant 0 : i32
    return %c0_i32, %c0_i32_0 : i32, i32
  }
  func.func @transform_4(%arg0: i32) -> (i32, i32) {
    %c0_i32 = arith.constant 0 : i32
    %c0_i32_0 = arith.constant 0 : i32
    %c0_i32_1 = arith.constant 0 : i32
    return %c0_i32, %c0_i32_0 : i32, i32
  }
  func.func @transform_5(%arg0: i32) -> (i32, i32) {
    %c0_i32 = arith.constant 0 : i32
    %c0_i32_0 = arith.constant 0 : i32
    %c0_i32_1 = arith.constant 0 : i32
    return %c0_i32, %c0_i32_0 : i32, i32
  }
  func.func @transform_6(%arg0: i32) -> (i32, i32) {
    %c0_i32 = arith.constant 0 : i32
    %c0_i32_0 = arith.constant 0 : i32
    %c0_i32_1 = arith.constant 0 : i32
    return %c0_i32, %c0_i32_0 : i32, i32
  }
  func.func @transform_7(%arg0: i32) -> (i32, i32) {
    %c0_i32 = arith.constant 0 : i32
    %c0_i32_0 = arith.constant 0 : i32
    %c0_i32_1 = arith.constant 0 : i32
    return %c0_i32, %c0_i32_0 : i32, i32
  }
  func.func @transform_8(%arg0: i32) -> (i32, i32) {
    %c0_i32 = arith.constant 0 : i32
    %c0_i32_0 = arith.constant 0 : i32
    %c0_i32_1 = arith.constant 0 : i32
    return %c0_i32, %c0_i32_0 : i32, i32
  }
  func.func @transform_9(%arg0: i32) -> (i32, i32) {
    %c0_i32 = arith.constant 0 : i32
    %c0_i32_0 = arith.constant 0 : i32
    return %arg0, %c0_i32 : i32, i32
  }
}

</mosaic_0001>

<bundles_post_ra>
// kernel: tpu_custom_call.1
= control target key start
LH: loop header
LB: loop body
LE: loop exit
PB: predicated region body
PF: predicated region fallthrough
CT: control target
= control target key end

     0   :  { %14 = vsyncpa [#allocation3], 0  ;;  %s1209_s30 = smov 0   ;;  %s1317_s0 = inlined_call_operand.vmem [shape: bf16[64,32], index: 0, kind: input, shape index: {}]   ;;  %s1318_s1 = inlined_call_operand.vmem [shape: bf16[32,128], index: 1, kind: input, shape index: {}]   ;;  %s1319_s2 = inlined_call_operand.vmem [shape: f32[1,128], index: 2, kind: input, shape index: {}]   ;;  %s1320_s3 = inlined_call_operand.vmem [shape: bf16[128,128], index: 3, kind: input, shape index: {}]   ;;  %s1321_s4 = inlined_call_operand.vmem [shape: f32[1,128], index: 4, kind: input, shape index: {}]   ;;  %s1322_s5 = inlined_call_operand.hbm [shape: bf16[128,128], index: 5, kind: input, shape index: {}]   ;;  %s1323_s6 = inlined_call_operand.vmem [shape: f32[1,128], index: 6, kind: input, shape index: {}]   ;;  %s1324_s7 = inlined_call_operand.vmem [shape: bf16[128,2], index: 7, kind: input, shape index: {}]   ;;  %s1325_s8 = inlined_call_operand.vmem [shape: f32[1,2], index: 8, kind: input, shape index: {}]   ;;  %s1326_s9 = inlined_call_operand.vmem [shape: f32[64,2], index: 9, kind: output, shape index: {}]  }
   0x1 LB: > { %s920_s10 = sadd.s32 4294967295, %s1154_s30   ;;  %p922_p0 = scmp.ge.s32.totalorder %s1154_s30, 1  ;;  %s1154_s30 = sphi %s1209_s30, %s20_s30  }
   0x2   : > { %p245_p1 = scmp.lt.s32.totalorder %s1154_s30, 3  ;;  %s1156_s11 = smov [#allocation2]  }
   0x3   : > { %s269_s12 = sshll.u32 %s1156_s11, 4  ;;  %p1221_p3 = scmp.eq.s32.totalorder %s920_s10, 0  ;;  %s270_s12 = int_to_ptr.vmem [resolvable:$true] %s269_s12 }
   0x4   : > { %p1217_p2 = pnand %p922_p0, %p245_p1  ;;  %s1129_s15 = scalar_lea.vmem %s270_s12, 1024 }
   0x5   : > { %p1130_p7 = scmp.ne.s32.totalorder %s270_s12, %s1129_s15  ;;  %p1137_p10 = scmp.lt.s32.totalorder %s270_s12, %s270_s12 }
   0x6   : > { %p1073_p4 = pneg %p1217_p2  ;;  %p1138_p11 = scmp.lt.s32.totalorder %s1129_s15, %s1129_s15 }
   0x8   : > { %p1074_p5 = pnand %p1221_p3, %p1073_p4  ;;  %p1139_p12 = por %p1138_p11, %p1137_p10 }
   0xa   : > { %p1120_p6 = pneg %p1074_p5 }
   0xc   : > { %p1132_p8 = pnand %p1130_p7, %p1120_p6 }
   0xe   : > { %p1133_p9 = pneg %p1132_p8 }
  0x10   : > { %p1140_p13 = pnand %p1139_p12, %p1133_p9 }
  0x12   : > { %1143 = shalt.err (!%p1140_p13)
}
  0x13   : > { %s1157_s16 = smov 64   ;;  %s1158_s17 = smov 4  }
  0x14   : > { %1076 = dma.hbm_to_vmem [thread:$0]  (!%p1074_p5), %s1322_s5, 1024, %s270_s12, [#allocation3], %s1157_s16, %s1157_s16, %s1158_s17  }
  0x15   : > { %303 = sbr.rel (%p1217_p2) target bundleno = 859 (0x35b), region = 56 }
  0x1a   : > { %1149 = dma.done.wait (%p1221_p3), [#allocation3], 1024  }
  0x1b   : > { %1151 = vsyncadd (%p1221_p3), [#allocation3], 4294966272  ;;  %s927_s20 = sshll.u32 %s920_s10, 2  ;;  %v1090_v0 = vld [vmem:[%s1318_s1 + $0x8] sm:$0xff]   ;;  %v1091_v1 = vld [vmem:[%s1318_s1] sm:$0xff]   ;;  %vm389_vm0 = vcmask 261120  }
  0x1c   : > { %p340_p0 = scmp.lt.s32.totalorder %s927_s20, 7  ;;  %1001 = vmatprep.subr.bf16.mxu0 %v1090_v0  ;;  %v1094_v3 = vld [vmem:[%s1320_s3 + $0x38] sm:$0xff]   ;;  %v1095_v4 = vld [vmem:[%s1320_s3 + $0x30] sm:$0xff]   ;;  %v1096_v6 = vld [vmem:[%s1320_s3 + $0x28] sm:$0xff]   ;;  %vm847_vm13 = vcmask 15360  }
  0x1d   : > { %1002 = vmatpush3.bf16.msra.mxu0 %v1090_v0  ;;  %1009 = vmatprep.subr.bf16.mxu1 %v1094_v3  ;;  %v1097_v7 = vld [vmem:[%s1320_s3 + $0x20] sm:$0xff]   ;;  %v1098_v8 = vld [vmem:[%s1320_s3 + $0x18] sm:$0xff]   ;;  %v1099_v9 = vld [vmem:[%s1320_s3 + $0x10] sm:$0xff]  }
  0x1e   : > { %s1330_s20 = smov (!%p340_p0, %s927_s20), 7  ;;  %1003 = vmatprep.subr.bf16.mxu0 %v1091_v1  ;;  %1010 = vmatpush3.bf16.msra.mxu1 %v1094_v3  ;;  %v1100_v10 = vld [vmem:[%s1320_s3 + $0x8] sm:$0xff]   ;;  %v1101_v11 = vld [vmem:[%s1320_s3] sm:$0xff]   ;;  %v1102_v12 = vld [vmem:[#allocation2 + $0x38] sm:$0xff]  }
  0x1f   : > { %s928_s21 = sshll.u32 %s1330_s20, 2  ;;  %1011 = vmatprep.subr.bf16.mxu1 %v1095_v4  ;;  %v1103_v13 = vld [vmem:[#allocation2 + $0x30] sm:$0xff]   ;;  %v1104_v14 = vld [vmem:[#allocation2 + $0x28] sm:$0xff]   ;;  %v1105_v15 = vld [vmem:[#allocation2 + $0x20] sm:$0xff]   ;;  %s930_s29 = sshll.u32 %s1330_s20, 3 }
  0x20   : > { %s343_s24 = scalar_lea.vmem %s1317_s0, %s928_s21  ;;  %v1106_v16 = vld [vmem:[#allocation2 + $0x18] sm:$0xff]   ;;  %v931_v18 = vld [vmem:[%s1319_s2] ss:$0 sm:$0xff]  ;;  %v1107_v36 = vld [vmem:[#allocation2 + $0x10] sm:$0xff]   ;;  %s349_s12 = scalar_lea.vmem %s1326_s9, %s930_s29 }
  0x21   : > { %v1092_v2 = vld [vmem:[%s343_s24] sm:$0xff]   ;;  %v1093_v5 = vld [vmem:[%s343_s24 + $0x8] sm:$0xff]   ;;  %1004 = vmatpush3.bf16.msra.mxu0 %v1091_v1  ;;  %v1110_v39 = vld [vmem:[%s1324_s7 + $0x38] sm:$0xff]  }
  0x22   : > { %1005 = vmatprep.mubr.msk.bf16.mxu0 %vm389_vm0, %v1092_v2  ;;  %1012 = vmatpush3.bf16.msra.mxu1 %v1095_v4  ;;  %v1108_v37 = vld [vmem:[#allocation2 + $0x8] sm:$0xff]   ;;  %v1109_v38 = vld [vmem:[#allocation2] sm:$0xff]   ;;  %v1111_v40 = vld [vmem:[%s1324_s7 + $0x30] sm:$0xff]  }
  0x23   : > { %1013 = vmatprep.subr.bf16.mxu1 %v1096_v6  ;;  %1029 = vmatprep.subr.bf16.mxu0 %v1102_v12  ;;  %v1112_v41 = vld [vmem:[%s1324_s7 + $0x28] sm:$0xff]   ;;  %v1113_v42 = vld [vmem:[%s1324_s7 + $0x20] sm:$0xff]   ;;  %v1114_v43 = vld [vmem:[%s1324_s7 + $0x18] sm:$0xff]  }
  0x24   : > { %1006 = vmatmul.mubr.msk.bf16.vlgmr.msra.gmra.mxu0 %vm389_vm0, %v1093_v5  ;;  %v938_v45 = vld [vmem:[%s1321_s4] ss:$0 sm:$0xff]  ;;  %v1115_v63 = vld [vmem:[%s1324_s7 + $0x10] sm:$0xff]   ;;  %v1116_v0 = vld [vmem:[%s1324_s7 + $0x8] sm:$0xff]  }
  0x25   : > { %1030 = vmatpush3.bf16.msra.mxu0 %v1102_v12  ;;  %v1117_v1 = vld [vmem:[%s1324_s7] sm:$0xff]  }
  0x26   : > { %1014 = vmatpush3.bf16.msra.mxu1 %v1096_v6  ;;  %1031 = vmatprep.subr.bf16.mxu0 %v1103_v13  ;;  %v947_v3 = vld [vmem:[%s1323_s6] ss:$0 sm:$0xff] }
  0x27   : > { %1015 = vmatprep.subr.bf16.mxu1 %v1097_v7 }
  0x29   : > { %1032 = vmatpush3.bf16.msra.mxu0 %v1103_v13 }
  0x2a   : > { %1016 = vmatpush3.bf16.msra.mxu1 %v1097_v7  ;;  %1033 = vmatprep.subr.bf16.mxu0 %v1104_v14 }
  0x2b   : > { %1017 = vmatprep.subr.bf16.mxu1 %v1098_v8 }
  0x2d   : > { %1034 = vmatpush3.bf16.msra.mxu0 %v1104_v14 }
  0x2e   : > { %1018 = vmatpush3.bf16.msra.mxu1 %v1098_v8  ;;  %1035 = vmatprep.subr.bf16.mxu0 %v1105_v15 }
  0x2f   : > { %1019 = vmatprep.subr.bf16.mxu1 %v1099_v9 }
  0x31   : > { %1036 = vmatpush3.bf16.msra.mxu0 %v1105_v15 }
  0x32   : > { %1020 = vmatpush3.bf16.msra.mxu1 %v1099_v9  ;;  %1037 = vmatprep.subr.bf16.mxu0 %v1106_v16 }
  0x33   : > { %1021 = vmatprep.subr.bf16.mxu1 %v1100_v10 }
  0x35   : > { %1038 = vmatpush3.bf16.msra.mxu0 %v1106_v16 }
  0x36   : > { %1022 = vmatpush3.bf16.msra.mxu1 %v1100_v10  ;;  %1039 = vmatprep.subr.bf16.mxu0 %v1107_v36 }
  0x37   : > { %1023 = vmatprep.subr.bf16.mxu1 %v1101_v11 }
  0x39   : > { %1040 = vmatpush3.bf16.msra.mxu0 %v1107_v36 }
  0x3a   : > { %1024 = vmatpush3.bf16.msra.mxu1 %v1101_v11  ;;  %1041 = vmatprep.subr.bf16.mxu0 %v1108_v37 }
  0x3b   : > { %1049 = vmatprep.subr.bf16.mxu1 %v1110_v39 }
  0x3d   : > { %1042 = vmatpush3.bf16.msra.mxu0 %v1108_v37 }
  0x3e   : > { %1043 = vmatprep.subr.bf16.mxu0 %v1109_v38 }
  0x41   : > { %1044 = vmatpush3.bf16.msra.mxu0 %v1109_v38 }
  0xe4   : > { %v1007_v17 = vpop.f32.mrf.mxu0 }
  0xe5   : > { %v439_v21 = vadd.f32 %v1007_v17, %v931_v18 }
  0xe6   : > { %v430_v19 = vpop.f32.mrf.mxu0 }
  0xe7   : > { %v431_v20 = vadd.f32 %v931_v18, %v430_v19  ;;  %v451_v28 = vmul.f32 0.01, %v439_v21  ;;  %vm447_vm3 = vcmp.ge.f32.partialorder %v439_v21, 0.0 }
  0xe8   : > { %v1008_v22 = vpop.f32.mrf.mxu0 }
  0xe9   : > { %v442_v23 = vadd.f32 %v1008_v22, %v931_v18  ;;  %v449_v25 = vmul.f32 0.01, %v431_v20  ;;  %vm445_vm2 = vcmp.ge.f32.partialorder %v431_v20, 0.0  ;;  %v455_v34 = vsel %vm447_vm3, %v439_v21, %v451_v28  ;;  %v956_v22 = vld [vmem:[%s1325_s8] ss:$0 sm:$0xff] }
  0xea   : > { %v433_v24 = vpop.f32.mrf.mxu0 }
  0xeb   : > { %vm448_vm1 = vcmp.ge.f32.partialorder %v442_v23, 0.0  ;;  %v452_v26 = vmul.f32 0.01, %v442_v23  ;;  %v434_v27 = vadd.f32 %v931_v18, %v433_v24  ;;  %v453_v31 = vsel %vm445_vm2, %v431_v20, %v449_v25 }
  0xed   : > { %v450_v29 = vmul.f32 0.01, %v434_v27  ;;  %vm446_vm4 = vcmp.ge.f32.partialorder %v434_v27, 0.0  ;;  %v456_v30 = vsel %vm448_vm1, %v442_v23, %v452_v26 }
  0xee   : > { %v458_v35 = vpack.c.bf16 %v456_v30, %v455_v34 }
  0xef   : > { %v454_v32 = vsel %vm446_vm4, %v434_v27, %v450_v29 }
  0xf0   : > { %v457_v33 = vpack.c.bf16 %v454_v32, %v453_v31 }
  0xf2   : > { %1025 = vmatprep.mubr.bf16.mxu1 %v457_v33 }
  0xf3   : > { %1026 = vmatmul.mubr.bf16.vlgmr.msra.gmra.mxu1 %v458_v35 }
  0xf4   : > { %1050 = vmatpush3.bf16.msra.mxu1 %v1110_v39 }
  0xf5   : > { %1051 = vmatprep.subr.bf16.mxu1 %v1111_v40 }
  0xf8   : > { %1052 = vmatpush3.bf16.msra.mxu1 %v1111_v40 }
  0xf9   : > { %1053 = vmatprep.subr.bf16.mxu1 %v1112_v41 }
  0xfc   : > { %1054 = vmatpush3.bf16.msra.mxu1 %v1112_v41 }
  0xfd   : > { %1055 = vmatprep.subr.bf16.mxu1 %v1113_v42 }
 0x100   : > { %1056 = vmatpush3.bf16.msra.mxu1 %v1113_v42 }
 0x101   : > { %1057 = vmatprep.subr.bf16.mxu1 %v1114_v43 }
 0x104   : > { %1058 = vmatpush3.bf16.msra.mxu1 %v1114_v43 }
 0x105   : > { %1059 = vmatprep.subr.bf16.mxu1 %v1115_v63 }
 0x108   : > { %1060 = vmatpush3.bf16.msra.mxu1 %v1115_v63 }
 0x109   : > { %1061 = vmatprep.subr.bf16.mxu1 %v1116_v0 }
 0x10c   : > { %1062 = vmatpush3.bf16.msra.mxu1 %v1116_v0 }
 0x10d   : > { %1063 = vmatprep.subr.bf16.mxu1 %v1117_v1 }
 0x110   : > { %1064 = vmatpush3.bf16.msra.mxu1 %v1117_v1 }
 0x1b3   : > { %v1027_v44 = vpop.f32.mrf.mxu1 }
 0x1b4   : > { %v573_v48 = vadd.f32 %v1027_v44, %v938_v45 }
 0x1b5   : > { %v564_v46 = vpop.f32.mrf.mxu1 }
 0x1b6   : > { %v565_v47 = vadd.f32 %v938_v45, %v564_v46  ;;  %v585_v55 = vmul.f32 0.01, %v573_v48  ;;  %vm581_vm7 = vcmp.ge.f32.partialorder %v573_v48, 0.0 }
 0x1b7   : > { %v1028_v49 = vpop.f32.mrf.mxu1 }
 0x1b8   : > { %v576_v50 = vadd.f32 %v1028_v49, %v938_v45  ;;  %v583_v52 = vmul.f32 0.01, %v565_v47  ;;  %vm579_vm6 = vcmp.ge.f32.partialorder %v565_v47, 0.0  ;;  %v589_v60 = vsel %vm581_vm7, %v573_v48, %v585_v55 }
 0x1b9   : > { %v567_v51 = vpop.f32.mrf.mxu1 }
 0x1ba   : > { %vm582_vm5 = vcmp.ge.f32.partialorder %v576_v50, 0.0  ;;  %v586_v53 = vmul.f32 0.01, %v576_v50  ;;  %v568_v54 = vadd.f32 %v938_v45, %v567_v51  ;;  %v587_v58 = vsel %vm579_vm6, %v565_v47, %v583_v52 }
 0x1bc   : > { %vm580_vm8 = vcmp.ge.f32.partialorder %v568_v54, 0.0  ;;  %v584_v56 = vmul.f32 0.01, %v568_v54  ;;  %v590_v57 = vsel %vm582_vm5, %v576_v50, %v586_v53 }
 0x1bd   : > { %v592_v62 = vpack.c.bf16 %v590_v57, %v589_v60 }
 0x1be   : > { %v588_v59 = vsel %vm580_vm8, %v568_v54, %v584_v56 }
 0x1bf   : > { %v591_v61 = vpack.c.bf16 %v588_v59, %v587_v58 }
 0x1c1   : > { %1045 = vmatprep.mubr.bf16.mxu0 %v591_v61 }
 0x1c2   : > { %1046 = vmatmul.mubr.bf16.vlgmr.msra.gmra.mxu0 %v592_v62 }
 0x282   : > { %v1047_v2 = vpop.f32.mrf.mxu0 }
 0x283   : > { %v707_v6 = vadd.f32 %v1047_v2, %v947_v3 }
 0x284   : > { %v698_v4 = vpop.f32.mrf.mxu0 }
 0x285   : > { %v699_v5 = vadd.f32 %v947_v3, %v698_v4  ;;  %v719_v13 = vmul.f32 0.01, %v707_v6  ;;  %vm715_vm11 = vcmp.ge.f32.partialorder %v707_v6, 0.0 }
 0x286   : > { %v1048_v7 = vpop.f32.mrf.mxu0 }
 0x287   : > { %v710_v8 = vadd.f32 %v1048_v7, %v947_v3  ;;  %v717_v10 = vmul.f32 0.01, %v699_v5  ;;  %vm713_vm10 = vcmp.ge.f32.partialorder %v699_v5, 0.0  ;;  %v723_v18 = vsel %vm715_vm11, %v707_v6, %v719_v13 }
 0x288   : > { %v701_v9 = vpop.f32.mrf.mxu0 }
 0x289   : > { %vm716_vm9 = vcmp.ge.f32.partialorder %v710_v8, 0.0  ;;  %v720_v11 = vmul.f32 0.01, %v710_v8  ;;  %v702_v12 = vadd.f32 %v947_v3, %v701_v9  ;;  %v721_v16 = vsel %vm713_vm10, %v699_v5, %v717_v10 }
 0x28b   : > { %vm714_vm12 = vcmp.ge.f32.partialorder %v702_v12, 0.0  ;;  %v718_v14 = vmul.f32 0.01, %v702_v12  ;;  %v724_v15 = vsel %vm716_vm9, %v710_v8, %v720_v11 }
 0x28c   : > { %v726_v20 = vpack.c.bf16 %v724_v15, %v723_v18 }
 0x28d   : > { %v722_v17 = vsel %vm714_vm12, %v702_v12, %v718_v14 }
 0x28e   : > { %v725_v19 = vpack.c.bf16 %v722_v17, %v721_v16 }
 0x290   : > { %1065 = vmatprep.mubr.bf16.mxu1 %v725_v19 }
 0x291   : > { %1066 = vmatmul.mubr.bf16.vlgmr.msra.gmra.mxu1 %v726_v20 }
 0x351   : > { %v1067_v21 = vpop.f32.mrf.mxu1 }
 0x352   : > { %v841_v28 = vadd.f32 %v1067_v21, %v956_v22 }
 0x353   : > { %v832_v23 = vpop.f32.mrf.mxu1 }
 0x354   : > { %v833_v24 = vadd.f32 %v956_v22, %v832_v23  ;;  %850 = vst.msk [vmem:[%s349_s12 + $0x10] sm:$0xff] %vm847_vm13, %v841_v28 }
 0x355   : > { %v1068_v25 = vpop.f32.mrf.mxu1 }
 0x356   : > { %848 = vst.msk [vmem:[%s349_s12] sm:$0xff] %vm847_vm13, %v833_v24  ;;  %v844_v29 = vadd.f32 %v1068_v25, %v956_v22 }
 0x357   : > { %v835_v26 = vpop.f32.mrf.mxu1 }
 0x358   : > { %v836_v27 = vadd.f32 %v956_v22, %v835_v26  ;;  %851 = vst.msk [vmem:[%s349_s12 + $0x18] sm:$0xff] %vm847_vm13, %v844_v29 }
 0x35a   : > { %849 = vst.msk [vmem:[%s349_s12 + $0x8] sm:$0xff] %vm847_vm13, %v836_v27 }
 0x35b PF: > { %s20_s30 = sadd.s32 1, %s1154_s30  }
 0x35c   : > { %p17_p1 = scmp.ge.s32.totalorder %s20_s30, 4  }
 0x35e   :  { %19 = sbr.rel (!%p17_p1) target bundleno = 1 (0x1), region = 91 }
 0x363   :  { %874 = vsyncpa [#allocation3], 1 }
 0x364   :  { %876 = vsyncpa [#allocation3 + $0x1], 1 }

</bundles_post_ra>
